<compile_context>
chip_gen: v7x
topology: tpu7x:2x2x1
jax: 0.10.0
libtpu: 0.0.40
codegen_flags: <defaults>
</compile_context>

<pallas_src>
import functools

import jax
import jax.numpy as jnp
from jax.experimental import pallas as pl
from jax.experimental.pallas import tpu as pltpu


# --------------------------------- kernels ----------------------------------

def qkv_proj_kernel(x_ref, qw_ref, qb_ref, kw_ref, kb_ref, vw_ref, vb_ref,
                    q_ref, k_ref, v_ref):
    # x_ref: (Tm, D) bf16 ; weights (D, D) bf16 ; biases (1, D) f32
    x = x_ref[...]
    q = jnp.dot(x, qw_ref[...], preferred_element_type=jnp.float32) + qb_ref[...]
    k = jnp.dot(x, kw_ref[...], preferred_element_type=jnp.float32) + kb_ref[...]
    v = jnp.dot(x, vw_ref[...], preferred_element_type=jnp.float32) + vb_ref[...]
    q_ref[...] = q.astype(q_ref.dtype)
    k_ref[...] = k.astype(k_ref.dtype)
    v_ref[...] = v.astype(v_ref.dtype)


def attn_out_kernel(q_ref, k_ref, v_ref, ow_ref, ob_ref, w_ref, o_ref,
                    acc_ref, *, scale):
    # q_ref: (1,1,Tq,hd) bf16 ; k_ref/v_ref: (1,1,S,hd) bf16
    # ow_ref: (1,hd,D) bf16 ; ob_ref: (1,D) f32
    # w_ref: (1,1,Tq,S) f32 ; o_ref: (1,Tq,D) ; acc_ref: (Tq,D) f32 scratch
    h = pl.program_id(2)

    @pl.when(h == 0)
    def _():
        acc_ref[...] = jnp.zeros_like(acc_ref)

    q = q_ref[0, 0]
    k = k_ref[0, 0]
    v = v_ref[0, 0]

    # scores = q @ k^T (contract head_dim), f32 accumulation on the MXU.
    s = jax.lax.dot_general(q, k, (((1,), (1,)), ((), ())),
                            preferred_element_type=jnp.float32) * scale
    s = s - jnp.max(s, axis=-1, keepdims=True)          # stable f32 softmax
    p = jnp.exp(s)
    denom = jnp.sum(p, axis=-1, keepdims=True)
    p = p * pl.reciprocal(denom, approx=True)           # EUP slot, not VPU divide
    w_ref[0, 0] = p                                     # f32 attention weights out

    # Per-head context, then fold this head's slice of the output projection
    # into the resident f32 accumulator -> ctx never round-trips HBM.
    ctx = jnp.dot(p.astype(v.dtype), v, preferred_element_type=jnp.float32)
    acc_ref[...] += jnp.dot(ctx.astype(ow_ref.dtype), ow_ref[0],
                            preferred_element_type=jnp.float32)

    @pl.when(h == pl.num_programs(2) - 1)
    def _():
        o_ref[0] = (acc_ref[...] + ob_ref[...]).astype(o_ref.dtype)


# ----------------------------- pallas wrappers -------------------------------

def _replicated_spec(shape):
    nd = len(shape)
    return pl.BlockSpec(shape, lambda *_, _n=nd: (0,) * _n)


def _pick_tile(n, cap):
    # Largest divisor of n that is <= cap and a multiple of 8 (or n itself).
    for t in range(min(cap, n), 0, -1):
        if n % t == 0 and (t % 8 == 0 or t == n):
            return t
    return n


def qkv_proj_call(x, qw, qb, kw, kb, vw, vb, *, row_tile):
    N, D = x.shape
    row_spec = pl.BlockSpec((row_tile, D), lambda i: (i, 0))
    out_sds = jax.ShapeDtypeStruct((N, D), jnp.bfloat16)
    return pl.pallas_call(
        qkv_proj_kernel,
        out_shape=(out_sds, out_sds, out_sds),
        grid_spec=pltpu.PrefetchScalarGridSpec(
            num_scalar_prefetch=0,
            grid=(N // row_tile,),
            in_specs=[row_spec,
                      _replicated_spec(qw.shape), _replicated_spec(qb.shape),
                      _replicated_spec(kw.shape), _replicated_spec(kb.shape),
                      _replicated_spec(vw.shape), _replicated_spec(vb.shape)],
            out_specs=(row_spec, row_spec, row_spec)),
        compiler_params=pltpu.CompilerParams(
            dimension_semantics=("parallel",)),
    )(x, qw, qb, kw, kb, vw, vb)


def attn_out_call(q, k, v, ow_heads, ob, *, scale, q_tile, out_dtype):
    # q/k/v: (B, H, S, hd) bf16 ; ow_heads: (H, hd, D) bf16 ; ob: (1, D) f32
    B, H, S, hd = q.shape
    D = ow_heads.shape[-1]
    nq = S // q_tile
    kern = functools.partial(attn_out_kernel, scale=scale)

    q_spec = pl.BlockSpec((1, 1, q_tile, hd), lambda b, i, h: (b, h, i, 0))
    kv_spec = pl.BlockSpec((1, 1, S, hd), lambda b, i, h: (b, h, 0, 0))
    ow_spec = pl.BlockSpec((1, hd, D), lambda b, i, h: (h, 0, 0))
    ob_spec = pl.BlockSpec((1, D), lambda b, i, h: (0, 0))
    w_spec = pl.BlockSpec((1, 1, q_tile, S), lambda b, i, h: (b, h, i, 0))
    o_spec = pl.BlockSpec((1, q_tile, D), lambda b, i, h: (b, i, 0))

    return pl.pallas_call(
        kern,
        out_shape=(jax.ShapeDtypeStruct((B, H, S, S), jnp.float32),
                   jax.ShapeDtypeStruct((B, S, D), out_dtype)),
        grid_spec=pltpu.PrefetchScalarGridSpec(
            num_scalar_prefetch=0,
            grid=(B, nq, H),
            in_specs=[q_spec, kv_spec, kv_spec, ow_spec, ob_spec],
            out_specs=(w_spec, o_spec),
            scratch_shapes=[pltpu.VMEM((q_tile, D), jnp.float32)]),
        compiler_params=pltpu.CompilerParams(
            dimension_semantics=("parallel", "parallel", "arbitrary")),
    )(q, k, v, ow_heads, ob)


# ------------------------------- module glue ---------------------------------

def siglip_attention(hidden_states, params, *, num_heads):
    """Matches SiglipAttention.forward -> (attn_output, attn_weights)."""
    B, S, D = hidden_states.shape
    assert D % num_heads == 0
    hd = D // num_heads
    scale = hd ** (-0.5)
    compute_dtype = jnp.bfloat16

    # bf16 matmul operands (f32 accumulation inside the kernels).
    x = hidden_states.astype(compute_dtype).reshape(B * S, D)
    qw = params["q_w"].astype(compute_dtype)
    kw = params["k_w"].astype(compute_dtype)
    vw = params["v_w"].astype(compute_dtype)
    # Output-projection weight pre-split per head: (H, hd, D).
    ow_heads = params["o_w"].astype(compute_dtype).reshape(num_heads, hd, D)

    row_tile = _pick_tile(B * S, 128)
    q, k, v = qkv_proj_call(x, qw, params["q_b"], kw, params["k_b"],
                            vw, params["v_b"], row_tile=row_tile)

    # Head split: cheap XLA layout plumbing, outside the kernels.
    def to_heads(t):
        return t.reshape(B, S, num_heads, hd).transpose(0, 2, 1, 3)

    qh, kh, vh = to_heads(q), to_heads(k), to_heads(v)

    q_tile = _pick_tile(S, 128)
    attn_weights, out = attn_out_call(qh, kh, vh, ow_heads, params["o_b"],
                                      scale=scale, q_tile=q_tile,
                                      out_dtype=hidden_states.dtype)
    return out, attn_weights


# ---------------------------- pure-JAX reference -----------------------------

def reference_attention(hidden_states, params, *, num_heads):
    B, S, D = hidden_states.shape
    hd = D // num_heads
    scale = hd ** (-0.5)
    q = hidden_states @ params["q_w"] + params["q_b"]
    k = hidden_states @ params["k_w"] + params["k_b"]
    v = hidden_states @ params["v_w"] + params["v_b"]

    def to_heads(t):
        return t.reshape(B, S, num_heads, hd).transpose(0, 2, 1, 3)

    q, k, v = to_heads(q), to_heads(k), to_heads(v)
    w = jnp.einsum("bhqd,bhkd->bhqk", q, k) * scale
    w = jax.nn.softmax(w.astype(jnp.float32), axis=-1)
    a = jnp.einsum("bhqk,bhkd->bhqd", w, v)
    a = a.transpose(0, 2, 1, 3).reshape(B, S, D)
    out = a @ params["o_w"] + params["o_b"]
    return out, w


# ---------------------------------- params -----------------------------------

def init_params(key, d):
    s = 0.02
    ks = jax.random.split(key, 8)
    return {
        "q_w": jax.random.normal(ks[0], (d, d), jnp.float32) * s,
        "q_b": jax.random.normal(ks[1], (1, d), jnp.float32) * s,
        "k_w": jax.random.normal(ks[2], (d, d), jnp.float32) * s,
        "k_b": jax.random.normal(ks[3], (1, d), jnp.float32) * s,
        "v_w": jax.random.normal(ks[4], (d, d), jnp.float32) * s,
        "v_b": jax.random.normal(ks[5], (1, d), jnp.float32) * s,
        "o_w": jax.random.normal(ks[6], (d, d), jnp.float32) * s,
        "o_b": jax.random.normal(ks[7], (1, d), jnp.float32) * s,
    }


# ----------------------------------- main -------------------------------------

if __name__ == "__main__":
    B, S, D, H = 2, 128, 64, 4          # small shapes; head_dim = 16

    key = jax.random.PRNGKey(0)
    pkey, xkey = jax.random.split(key)
    params = init_params(pkey, D)
    hidden_states = jax.random.normal(xkey, (B, S, D), jnp.float32)

    out, attn_w = siglip_attention(hidden_states, params, num_heads=H)
    out = jax.block_until_ready(out)
    attn_w = jax.block_until_ready(attn_w)

    ref_out, ref_w = reference_attention(hidden_states, params, num_heads=H)

    assert out.shape == (B, S, D), out.shape
    assert attn_w.shape == (B, H, S, S), attn_w.shape

    # bf16 matmul operands (f32 accumulation / f32 softmax) vs. f32 reference:
    # tolerance loosened accordingly.
    err_o = float(jnp.max(jnp.abs(out - ref_out)))
    err_w = float(jnp.max(jnp.abs(attn_w - ref_w)))
    assert err_o < 2e-2, f"attn_output max abs err {err_o}"
    assert err_w < 2e-2, f"attn_weights max abs err {err_w}"

    print("KERNEL_OK")
</pallas_src>

<mosaic_0001>
module attributes {stable_mosaic.version = 11 : i64} {
  func.func @qkv_proj_kernel(%arg0: i32, %arg1: memref<128x64xbf16, #tpu.memory_space<vmem>>, %arg2: memref<64x64xbf16, #tpu.memory_space<vmem>>, %arg3: memref<1x64xf32, #tpu.memory_space<vmem>>, %arg4: memref<64x64xbf16, #tpu.memory_space<vmem>>, %arg5: memref<1x64xf32, #tpu.memory_space<vmem>>, %arg6: memref<64x64xbf16, #tpu.memory_space<vmem>>, %arg7: memref<1x64xf32, #tpu.memory_space<vmem>>, %arg8: memref<128x64xbf16, #tpu.memory_space<vmem>>, %arg9: memref<128x64xbf16, #tpu.memory_space<vmem>>, %arg10: memref<128x64xbf16, #tpu.memory_space<vmem>>) attributes {dimension_semantics = [#tpu.dimension_semantics<parallel>], iteration_bounds = array<i64: 2>, scalar_prefetch = 0 : i64, scratch_operands = 0 : i64, tpu.core_type = #tpu.core_type<tc>, window_params = [{transform_indices = @transform_0, window_bounds = array<i64: 128, 64>}, {pipeline_mode = #tpu.pipeline_mode<synchronous>, transform_indices = @transform_1, window_bounds = array<i64: 64, 64>}, {pipeline_mode = #tpu.pipeline_mode<synchronous>, transform_indices = @transform_2, window_bounds = array<i64: 1, 64>}, {pipeline_mode = #tpu.pipeline_mode<synchronous>, transform_indices = @transform_3, window_bounds = array<i64: 64, 64>}, {pipeline_mode = #tpu.pipeline_mode<synchronous>, transform_indices = @transform_4, window_bounds = array<i64: 1, 64>}, {pipeline_mode = #tpu.pipeline_mode<synchronous>, transform_indices = @transform_5, window_bounds = array<i64: 64, 64>}, {pipeline_mode = #tpu.pipeline_mode<synchronous>, transform_indices = @transform_6, window_bounds = array<i64: 1, 64>}, {transform_indices = @transform_7, window_bounds = array<i64: 128, 64>}, {transform_indices = @transform_8, window_bounds = array<i64: 128, 64>}, {transform_indices = @transform_9, window_bounds = array<i64: 128, 64>}]} {
    %c0 = arith.constant 0 : index
    %c0_0 = arith.constant 0 : index
    %0 = vector.load %arg1[%c0, %c0_0] : memref<128x64xbf16, #tpu.memory_space<vmem>>, vector<128x64xbf16>
    %c0_1 = arith.constant 0 : index
    %c0_2 = arith.constant 0 : index
    %1 = vector.load %arg2[%c0_1, %c0_2] : memref<64x64xbf16, #tpu.memory_space<vmem>>, vector<64x64xbf16>
    %cst = arith.constant dense<0.000000e+00> : vector<128x64xf32>
    %2 = tpu.matmul %0, %1, %cst {dimension_numbers = #tpu.dot_dimension_numbers<[1], [0], [0], [1], [0, 0, 1, 1], [], []>} : vector<128x64xbf16>, vector<64x64xbf16>, vector<128x64xf32> -> vector<128x64xf32>
    %c0_3 = arith.constant 0 : index
    %c0_4 = arith.constant 0 : index
    %3 = vector.load %arg3[%c0_3, %c0_4] : memref<1x64xf32, #tpu.memory_space<vmem>>, vector<1x64xf32>
    %4 = vector.broadcast %3 : vector<1x64xf32> to vector<128x64xf32>
    %5 = arith.addf %2, %4 : vector<128x64xf32>
    %c0_5 = arith.constant 0 : index
    %c0_6 = arith.constant 0 : index
    %6 = vector.load %arg4[%c0_5, %c0_6] : memref<64x64xbf16, #tpu.memory_space<vmem>>, vector<64x64xbf16>
    %cst_7 = arith.constant dense<0.000000e+00> : vector<128x64xf32>
    %7 = tpu.matmul %0, %6, %cst_7 {dimension_numbers = #tpu.dot_dimension_numbers<[1], [0], [0], [1], [0, 0, 1, 1], [], []>} : vector<128x64xbf16>, vector<64x64xbf16>, vector<128x64xf32> -> vector<128x64xf32>
    %c0_8 = arith.constant 0 : index
    %c0_9 = arith.constant 0 : index
    %8 = vector.load %arg5[%c0_8, %c0_9] : memref<1x64xf32, #tpu.memory_space<vmem>>, vector<1x64xf32>
    %9 = vector.broadcast %8 : vector<1x64xf32> to vector<128x64xf32>
    %10 = arith.addf %7, %9 : vector<128x64xf32>
    %c0_10 = arith.constant 0 : index
    %c0_11 = arith.constant 0 : index
    %11 = vector.load %arg6[%c0_10, %c0_11] : memref<64x64xbf16, #tpu.memory_space<vmem>>, vector<64x64xbf16>
    %cst_12 = arith.constant dense<0.000000e+00> : vector<128x64xf32>
    %12 = tpu.matmul %0, %11, %cst_12 {dimension_numbers = #tpu.dot_dimension_numbers<[1], [0], [0], [1], [0, 0, 1, 1], [], []>} : vector<128x64xbf16>, vector<64x64xbf16>, vector<128x64xf32> -> vector<128x64xf32>
    %c0_13 = arith.constant 0 : index
    %c0_14 = arith.constant 0 : index
    %13 = vector.load %arg7[%c0_13, %c0_14] : memref<1x64xf32, #tpu.memory_space<vmem>>, vector<1x64xf32>
    %14 = vector.broadcast %13 : vector<1x64xf32> to vector<128x64xf32>
    %15 = arith.addf %12, %14 : vector<128x64xf32>
    %16 = arith.truncf %5 : vector<128x64xf32> to vector<128x64xbf16>
    %c0_15 = arith.constant 0 : index
    %c0_16 = arith.constant 0 : index
    %17 = vector.load %arg8[%c0_15, %c0_16] : memref<128x64xbf16, #tpu.memory_space<vmem>>, vector<128x64xbf16>
    tpu.vector_store %arg8[%c0_15, %c0_16], %16 {strides = array<i32>} : memref<128x64xbf16, #tpu.memory_space<vmem>>, vector<128x64xbf16>,
    %18 = arith.truncf %10 : vector<128x64xf32> to vector<128x64xbf16>
    %c0_17 = arith.constant 0 : index
    %c0_18 = arith.constant 0 : index
    %19 = vector.load %arg9[%c0_17, %c0_18] : memref<128x64xbf16, #tpu.memory_space<vmem>>, vector<128x64xbf16>
    tpu.vector_store %arg9[%c0_17, %c0_18], %18 {strides = array<i32>} : memref<128x64xbf16, #tpu.memory_space<vmem>>, vector<128x64xbf16>,
    %20 = arith.truncf %15 : vector<128x64xf32> to vector<128x64xbf16>
    %c0_19 = arith.constant 0 : index
    %c0_20 = arith.constant 0 : index
    %21 = vector.load %arg10[%c0_19, %c0_20] : memref<128x64xbf16, #tpu.memory_space<vmem>>, vector<128x64xbf16>
    tpu.vector_store %arg10[%c0_19, %c0_20], %20 {strides = array<i32>} : memref<128x64xbf16, #tpu.memory_space<vmem>>, vector<128x64xbf16>,
    return
  }
  func.func @transform_0(%arg0: i32) -> (i32, i32) {
    %c0_i32 = arith.constant 0 : i32
    %c0_i32_0 = arith.constant 0 : i32
    return %arg0, %c0_i32 : i32, i32
  }
  func.func @transform_1(%arg0: i32) -> (i32, i32) {
    %c0_i32 = arith.constant 0 : i32
    %c0_i32_0 = arith.constant 0 : i32
    %c0_i32_1 = arith.constant 0 : i32
    return %c0_i32, %c0_i32_0 : i32, i32
  }
  func.func @transform_2(%arg0: i32) -> (i32, i32) {
    %c0_i32 = arith.constant 0 : i32
    %c0_i32_0 = arith.constant 0 : i32
    %c0_i32_1 = arith.constant 0 : i32
    return %c0_i32, %c0_i32_0 : i32, i32
  }
  func.func @transform_3(%arg0: i32) -> (i32, i32) {
    %c0_i32 = arith.constant 0 : i32
    %c0_i32_0 = arith.constant 0 : i32
    %c0_i32_1 = arith.constant 0 : i32
    return %c0_i32, %c0_i32_0 : i32, i32
  }
  func.func @transform_4(%arg0: i32) -> (i32, i32) {
    %c0_i32 = arith.constant 0 : i32
    %c0_i32_0 = arith.constant 0 : i32
    %c0_i32_1 = arith.constant 0 : i32
    return %c0_i32, %c0_i32_0 : i32, i32
  }
  func.func @transform_5(%arg0: i32) -> (i32, i32) {
    %c0_i32 = arith.constant 0 : i32
    %c0_i32_0 = arith.constant 0 : i32
    %c0_i32_1 = arith.constant 0 : i32
    return %c0_i32, %c0_i32_0 : i32, i32
  }
  func.func @transform_6(%arg0: i32) -> (i32, i32) {
    %c0_i32 = arith.constant 0 : i32
    %c0_i32_0 = arith.constant 0 : i32
    %c0_i32_1 = arith.constant 0 : i32
    return %c0_i32, %c0_i32_0 : i32, i32
  }
  func.func @transform_7(%arg0: i32) -> (i32, i32) {
    %c0_i32 = arith.constant 0 : i32
    %c0_i32_0 = arith.constant 0 : i32
    return %arg0, %c0_i32 : i32, i32
  }
  func.func @transform_8(%arg0: i32) -> (i32, i32) {
    %c0_i32 = arith.constant 0 : i32
    %c0_i32_0 = arith.constant 0 : i32
    return %arg0, %c0_i32 : i32, i32
  }
  func.func @transform_9(%arg0: i32) -> (i32, i32) {
    %c0_i32 = arith.constant 0 : i32
    %c0_i32_0 = arith.constant 0 : i32
    return %arg0, %c0_i32 : i32, i32
  }
}

</mosaic_0001>

<bundles_post_ra>
// kernel: tpu_custom_call.1
= control target key start
LH: loop header
LB: loop body
LE: loop exit
PB: predicated region body
PF: predicated region fallthrough
CT: control target
= control target key end

     0   :  { %s1578_s30 = smov 0   ;;  %s1824_s0 = inlined_call_operand.vmem [shape: bf16[256,64], index: 0, kind: input, shape index: {}]   ;;  %s1825_s1 = inlined_call_operand.vmem [shape: bf16[64,64], index: 1, kind: input, shape index: {}]   ;;  %s1826_s2 = inlined_call_operand.vmem [shape: f32[1,64], index: 2, kind: input, shape index: {}]   ;;  %s1827_s3 = inlined_call_operand.vmem [shape: bf16[64,64], index: 3, kind: input, shape index: {}]   ;;  %s1828_s4 = inlined_call_operand.vmem [shape: f32[1,64], index: 4, kind: input, shape index: {}]   ;;  %s1829_s5 = inlined_call_operand.vmem [shape: bf16[64,64], index: 5, kind: input, shape index: {}]   ;;  %s1830_s6 = inlined_call_operand.vmem [shape: f32[1,64], index: 6, kind: input, shape index: {}]   ;;  %s1831_s7 = inlined_call_operand.vmem [shape: bf16[256,64], index: 7, kind: output, shape index: {0}]   ;;  %s1832_s8 = inlined_call_operand.vmem [shape: bf16[256,64], index: 8, kind: output, shape index: {1}]   ;;  %s1833_s9 = inlined_call_operand.vmem [shape: bf16[256,64], index: 9, kind: output, shape index: {2}]  }
   0x1 LB: > { %s1218_s10 = sadd.s32 4294967295, %s1526_s30   ;;  %p1222_p0 = scmp.ge.s32.totalorder %s1526_s30, 1  ;;  %s1526_s30 = sphi %s1578_s30, %s20_s30  }
   0x2   : > { %p293_p1 = scmp.lt.s32.totalorder %s1526_s30, 3 }
   0x4   : > { %p294_p2 = pnand %p1222_p0, %p293_p1 }
   0x5   : > { %v1500_v0 = vld [vmem:[%s1825_s1] sm:$0xff] (!%p294_p2)   ;;  %s1223_s13 = sshll.u32 (!%p294_p2), %s1218_s10, 4  ;;  %v1501_v1 = vld [vmem:[%s1825_s1 + $0x8] sm:$0xff] (!%p294_p2)   ;;  %v1502_v2 = vld [vmem:[%s1825_s1 + $0x10] sm:$0xff] (!%p294_p2)   ;;  %vm459_vm0 = vcmask (!%p294_p2), 523264   ;;  %vm917_vm1 = vcmask (!%p294_p2), 519168  }
   0x6   : > { %297 = sbr.rel (%p294_p2) target bundleno = 282 (0x11a), region = 48  ;;  %p340_p3 = scmp.lt.s32.totalorder (!%p294_p2), %s1223_s13, 31  ;;  %1412 = vmatprep.subr.bf16.mxu0 (!%p294_p2), %v1500_v0  ;;  %1484 = vmatprep.subr.bf16.mxu1 (!%p294_p2), %v1500_v0  ;;  %v1503_v3 = vld [vmem:[%s1825_s1 + $0x18] sm:$0xff] (!%p294_p2)   ;;  %v1508_v6 = vld [vmem:[%s1827_s3] sm:$0xff] (!%p294_p2)   ;;  %v1510_v10 = vld [vmem:[%s1827_s3 + $0x8] sm:$0xff] (!%p294_p2)  }
   0x7   : > { %1413 = vmatpush3.bf16.msra.mxu0 (!%p294_p2), %v1500_v0  ;;  %1488 = vmatpush3.bf16.msra.mxu1 (!%p294_p2), %v1500_v0  ;;  %v1509_v7 = vld [vmem:[%s1829_s5] sm:$0xff] (!%p294_p2)   ;;  %v1511_v11 = vld [vmem:[%s1829_s5 + $0x8] sm:$0xff] (!%p294_p2)   ;;  %v1516_v14 = vld [vmem:[%s1827_s3 + $0x10] sm:$0xff] (!%p294_p2)  }
   0x8   : > { %1414 = vmatprep.subr.bf16.mxu0 (!%p294_p2), %v1501_v1  ;;  %1485 = vmatprep.subr.bf16.mxu1 (!%p294_p2), %v1501_v1  ;;  %v1517_v15 = vld [vmem:[%s1829_s5 + $0x10] sm:$0xff] (!%p294_p2)   ;;  %v1518_v18 = vld [vmem:[%s1827_s3 + $0x18] sm:$0xff] (!%p294_p2)   ;;  %v1231_v20 = vld [vmem:[%s1826_s2] ss:$0 sm:$0xff] (!%p294_p2) }
   0x9   : > { %v1519_v19 = vld [vmem:[%s1829_s5 + $0x18] sm:$0xff] (!%p294_p2)  }
   0xb   : > { %1415 = vmatpush3.bf16.msra.mxu0 (!%p294_p2), %v1501_v1  ;;  %1489 = vmatpush3.bf16.msra.mxu1 (!%p294_p2), %v1501_v1 }
   0xc   : > { %1416 = vmatprep.subr.bf16.mxu0 (!%p294_p2), %v1502_v2  ;;  %1486 = vmatprep.subr.bf16.mxu1 (!%p294_p2), %v1502_v2 }
   0xd   : > { %s1835_s13 = smov (!%p340_p3, %s1223_s13), 31 }
   0xe   : > { %s1595_s18 = sshll.u32 %s1835_s13, 2 }
   0xf   : > { %s1604_s23 = scalar_lea.vmem %s1824_s0, %s1595_s18  ;;  %1417 = vmatpush3.bf16.msra.mxu0 %v1502_v2  ;;  %1490 = vmatpush3.bf16.msra.mxu1 %v1502_v2  ;;  %s1669_s25 = scalar_lea.vmem %s1831_s7, %s1595_s18 }
  0x10   : > { %v1504_v4 = vld [vmem:[%s1604_s23] sm:$0xff]   ;;  %1418 = vmatprep.subr.bf16.mxu0 %v1503_v3  ;;  %1487 = vmatprep.subr.bf16.mxu1 %v1503_v3  ;;  %v1506_v8 = vld [vmem:[%s1604_s23 + $0x8] sm:$0xff]   ;;  %v1512_v12 = vld [vmem:[%s1604_s23 + $0x10] sm:$0xff]   ;;  %s1719_s12 = scalar_lea.vmem %s1832_s8, %s1595_s18  ;;  %s1725_s15 = scalar_lea.vmem %s1833_s9, %s1595_s18 }
  0x11   : > { %v1505_v5 = vld [vmem:[%s1604_s23 + $0x20] sm:$0xff]   ;;  %1420 = vmatprep.mubr.msk.bf16.mxu0 %vm459_vm0, %v1504_v4  ;;  %v1507_v9 = vld [vmem:[%s1604_s23 + $0x28] sm:$0xff]   ;;  %v1513_v13 = vld [vmem:[%s1604_s23 + $0x30] sm:$0xff]  }
  0x12   : > { %1428 = vmatprep.mubr.msk.bf16.mxu1 %vm459_vm0, %v1505_v5  ;;  %v1514_v16 = vld [vmem:[%s1604_s23 + $0x18] sm:$0xff]  }
  0x13   : > { %1419 = vmatpush3.bf16.msra.mxu0 %v1503_v3  ;;  %1491 = vmatpush3.bf16.msra.mxu1 %v1503_v3  ;;  %v1515_v17 = vld [vmem:[%s1604_s23 + $0x38] sm:$0xff]  }
  0x14   : > { %1436 = vmatprep.subr.bf16.mxu1 %v1508_v6  ;;  %1460 = vmatprep.subr.bf16.mxu0 %v1509_v7 }
  0x16   : > { %1421 = vmatmul.mubr.msk.bf16.vlgmr.msra.gmra.mrb[0].mxu0 %vm459_vm0, %v1506_v8  ;;  %1429 = vmatmul.mubr.msk.bf16.vlgmr.msra.gmra.mrb[0].mxu1 %vm459_vm0, %v1507_v9 }
  0x17   : > { %1437 = vmatpush3.bf16.msra.mxu1 %v1508_v6  ;;  %1461 = vmatpush3.bf16.msra.mxu0 %v1509_v7  ;;  %v1703_v6 = vld [vmem:[%s1830_s6] ss:$0 sm:$0xff] }
  0x18   : > { %1438 = vmatprep.subr.bf16.mxu1 %v1510_v10  ;;  %1462 = vmatprep.subr.bf16.mxu0 %v1511_v11 }
  0x19   : > { %1424 = vmatprep.mubr.msk.bf16.mxu0 %vm459_vm0, %v1512_v12  ;;  %1432 = vmatprep.mubr.msk.bf16.mxu1 %vm459_vm0, %v1513_v13 }
  0x1b   : > { %1439 = vmatpush3.bf16.msra.mxu1 %v1510_v10  ;;  %1463 = vmatpush3.bf16.msra.mxu0 %v1511_v11 }
  0x1c   : > { %1440 = vmatprep.subr.bf16.mxu1 %v1516_v14  ;;  %1464 = vmatprep.subr.bf16.mxu0 %v1517_v15 }
  0x1e   : > { %1425 = vmatmul.mubr.msk.bf16.gmra.mrb[4].mxu0 %vm459_vm0, %v1514_v16  ;;  %1433 = vmatmul.mubr.msk.bf16.gmra.mrb[4].mxu1 %vm459_vm0, %v1515_v17 }
  0x1f   : > { %1441 = vmatpush3.bf16.msra.mxu1 %v1516_v14  ;;  %1465 = vmatpush3.bf16.msra.mxu0 %v1517_v15 }
  0x20   : > { %1442 = vmatprep.subr.bf16.mxu1 %v1518_v18  ;;  %1466 = vmatprep.subr.bf16.mxu0 %v1519_v19 }
  0x21   : > { %1444 = vmatprep.mubr.msk.bf16.mxu1 %vm459_vm0, %v1504_v4  ;;  %1468 = vmatprep.mubr.msk.bf16.mxu0 %vm459_vm0, %v1504_v4 }
  0x23   : > { %1443 = vmatpush3.bf16.msra.mxu1 %v1518_v18  ;;  %1467 = vmatpush3.bf16.msra.mxu0 %v1519_v19 }
  0x26   : > { %1445 = vmatmul.mubr.msk.bf16.vlgmr.msra.gmra.mrb[8].mxu1 %vm459_vm0, %v1506_v8  ;;  %1469 = vmatmul.mubr.msk.bf16.vlgmr.msra.gmra.mrb[8].mxu0 %vm459_vm0, %v1506_v8 }
  0x27   : > { %1448 = vmatprep.mubr.msk.bf16.mxu1 %vm459_vm0, %v1512_v12  ;;  %1472 = vmatprep.mubr.msk.bf16.mxu0 %vm459_vm0, %v1512_v12 }
  0x2e   : > { %1449 = vmatmul.mubr.msk.bf16.gmra.mrb[12].mxu1 %vm459_vm0, %v1514_v16  ;;  %1473 = vmatmul.mubr.msk.bf16.gmra.mrb[12].mxu0 %vm459_vm0, %v1514_v16 }
  0x2f   : > { %1452 = vmatprep.mubr.msk.bf16.mxu1 %vm459_vm0, %v1505_v5  ;;  %1476 = vmatprep.mubr.msk.bf16.mxu0 %vm459_vm0, %v1505_v5  ;;  %v1698_v5 = vld [vmem:[%s1828_s4] ss:$0 sm:$0xff] }
  0x36   : > { %1453 = vmatmul.mubr.msk.bf16.gmra.mrb[16].mxu1 %vm459_vm0, %v1507_v9  ;;  %1477 = vmatmul.mubr.msk.bf16.gmra.mrb[16].mxu0 %vm459_vm0, %v1507_v9 }
  0x37   : > { %1456 = vmatprep.mubr.msk.bf16.mxu1 %vm459_vm0, %v1513_v13  ;;  %1480 = vmatprep.mubr.msk.bf16.mxu0 %vm459_vm0, %v1513_v13 }
  0x3e   : > { %1457 = vmatmul.mubr.msk.bf16.gmra.mrb[20].mxu1 %vm459_vm0, %v1515_v17  ;;  %1481 = vmatmul.mubr.msk.bf16.gmra.mrb[20].mxu0 %vm459_vm0, %v1515_v17 }
  0xe9   : > { %v1422_v21 = vpop.f32.mrb[0].mxu0  ;;  %v1430_v22 = vpop.f32.mrb[0].mxu1 }
  0xea   : > { %v527_v23 = vadd.f32 %v1422_v21, %v1231_v20  ;;  %v559_v24 = vadd.f32 %v1430_v22, %v1231_v20  ;;  %v518_v25 = vpop.f32.mrb[1].mxu0  ;;  %v550_v26 = vpop.f32.mrb[1].mxu1 }
  0xeb   : > { %v519_v27 = vadd.f32 %v1231_v20, %v518_v25  ;;  %v551_v28 = vadd.f32 %v1231_v20, %v550_v26  ;;  %v1423_v29 = vpop.f32.mrb[2].mxu0  ;;  %v1431_v30 = vpop.f32.mrb[2].mxu1 }
  0xec   : > { %v1330_v31 = vpack.c.bf16 %v527_v23, %v527_v23  ;;  %v1338_v32 = vpack.c.bf16 %v559_v24, %v559_v24  ;;  %v530_v33 = vadd.f32 %v1423_v29, %v1231_v20  ;;  %v562_v34 = vadd.f32 %v1431_v30, %v1231_v20  ;;  %v521_v35 = vpop.f32.mrb[3].mxu0  ;;  %v553_v36 = vpop.f32.mrb[3].mxu1 }
  0xed   : > { %v1328_v37 = vpack.c.bf16 %v519_v27, %v519_v27  ;;  %v1336_v38 = vpack.c.bf16 %v551_v28, %v551_v28  ;;  %v522_v39 = vadd.f32 %v1231_v20, %v521_v35  ;;  %v554_v40 = vadd.f32 %v1231_v20, %v553_v36 }
  0xee   : > { %920 = vst.msk [vmem:[%s1669_s25 + $0x8] sm:$0xf] %vm917_vm1, %v1330_v31  ;;  %928 = vst.msk [vmem:[%s1669_s25 + $0x28] sm:$0xf] %vm917_vm1, %v1338_v32  ;;  %v1331_v41 = vpack.c.bf16 %v530_v33, %v530_v33  ;;  %v1339_v42 = vpack.c.bf16 %v562_v34, %v562_v34 }
  0xef   : > { %918 = vst.msk [vmem:[%s1669_s25] sm:$0xf] %vm917_vm1, %v1328_v37  ;;  %926 = vst.msk [vmem:[%s1669_s25 + $0x20] sm:$0xf] %vm917_vm1, %v1336_v38  ;;  %v1329_v43 = vpack.c.bf16 %v522_v39, %v522_v39  ;;  %v1337_v44 = vpack.c.bf16 %v554_v40, %v554_v40 }
  0xf0   : > { %921 = vst.msk [vmem:[%s1669_s25 + $0xc] sm:$0xf] %vm917_vm1, %v1331_v41  ;;  %929 = vst.msk [vmem:[%s1669_s25 + $0x2c] sm:$0xf] %vm917_vm1, %v1339_v42 }
  0xf1   : > { %919 = vst.msk [vmem:[%s1669_s25 + $0x4] sm:$0xf] %vm917_vm1, %v1329_v43  ;;  %927 = vst.msk [vmem:[%s1669_s25 + $0x24] sm:$0xf] %vm917_vm1, %v1337_v44  ;;  %v1426_v45 = vpop.f32.mrb[4].mxu0  ;;  %v1434_v46 = vpop.f32.mrb[4].mxu1 }
  0xf2   : > { %v543_v47 = vadd.f32 %v1426_v45, %v1231_v20  ;;  %v575_v48 = vadd.f32 %v1434_v46, %v1231_v20  ;;  %v534_v49 = vpop.f32.mrb[5].mxu0  ;;  %v566_v50 = vpop.f32.mrb[5].mxu1 }
  0xf3   : > { %v535_v51 = vadd.f32 %v1231_v20, %v534_v49  ;;  %v567_v52 = vadd.f32 %v1231_v20, %v566_v50  ;;  %v1427_v53 = vpop.f32.mrb[6].mxu0  ;;  %v1435_v54 = vpop.f32.mrb[6].mxu1 }
  0xf4   : > { %v1334_v55 = vpack.c.bf16 %v543_v47, %v543_v47  ;;  %v1342_v56 = vpack.c.bf16 %v575_v48, %v575_v48  ;;  %v546_v57 = vadd.f32 %v1427_v53, %v1231_v20  ;;  %v578_v58 = vadd.f32 %v1435_v54, %v1231_v20  ;;  %v537_v59 = vpop.f32.mrb[7].mxu0  ;;  %v569_v60 = vpop.f32.mrb[7].mxu1 }
  0xf5   : > { %v1332_v61 = vpack.c.bf16 %v535_v51, %v535_v51  ;;  %v1340_v62 = vpack.c.bf16 %v567_v52, %v567_v52  ;;  %v538_v63 = vadd.f32 %v1231_v20, %v537_v59  ;;  %v570_v0 = vadd.f32 %v1231_v20, %v569_v60 }
  0xf6   : > { %924 = vst.msk [vmem:[%s1669_s25 + $0x18] sm:$0xf] %vm917_vm1, %v1334_v55  ;;  %932 = vst.msk [vmem:[%s1669_s25 + $0x38] sm:$0xf] %vm917_vm1, %v1342_v56  ;;  %v1335_v1 = vpack.c.bf16 %v546_v57, %v546_v57  ;;  %v1343_v2 = vpack.c.bf16 %v578_v58, %v578_v58 }
  0xf7   : > { %922 = vst.msk [vmem:[%s1669_s25 + $0x10] sm:$0xf] %vm917_vm1, %v1332_v61  ;;  %930 = vst.msk [vmem:[%s1669_s25 + $0x30] sm:$0xf] %vm917_vm1, %v1340_v62  ;;  %v1333_v3 = vpack.c.bf16 %v538_v63, %v538_v63  ;;  %v1341_v4 = vpack.c.bf16 %v570_v0, %v570_v0 }
  0xf8   : > { %925 = vst.msk [vmem:[%s1669_s25 + $0x1c] sm:$0xf] %vm917_vm1, %v1335_v1  ;;  %933 = vst.msk [vmem:[%s1669_s25 + $0x3c] sm:$0xf] %vm917_vm1, %v1343_v2 }
  0xf9   : > { %923 = vst.msk [vmem:[%s1669_s25 + $0x14] sm:$0xf] %vm917_vm1, %v1333_v3  ;;  %931 = vst.msk [vmem:[%s1669_s25 + $0x34] sm:$0xf] %vm917_vm1, %v1341_v4  ;;  %v1446_v7 = vpop.f32.mrb[8].mxu1  ;;  %v1470_v8 = vpop.f32.mrb[8].mxu0 }
  0xfa   : > { %v663_v9 = vadd.f32 %v1446_v7, %v1698_v5  ;;  %v799_v10 = vadd.f32 %v1470_v8, %v1703_v6  ;;  %v654_v11 = vpop.f32.mrb[9].mxu1  ;;  %v790_v12 = vpop.f32.mrb[9].mxu0 }
  0xfb   : > { %v655_v13 = vadd.f32 %v1698_v5, %v654_v11  ;;  %v791_v14 = vadd.f32 %v1703_v6, %v790_v12  ;;  %v1447_v15 = vpop.f32.mrb[10].mxu1  ;;  %v1471_v16 = vpop.f32.mrb[10].mxu0 }
  0xfc   : > { %v1346_v17 = vpack.c.bf16 %v663_v9, %v663_v9  ;;  %v1362_v18 = vpack.c.bf16 %v799_v10, %v799_v10  ;;  %v666_v19 = vadd.f32 %v1447_v15, %v1698_v5  ;;  %v802_v20 = vadd.f32 %v1471_v16, %v1703_v6  ;;  %v657_v21 = vpop.f32.mrb[11].mxu1  ;;  %v793_v22 = vpop.f32.mrb[11].mxu0 }
  0xfd   : > { %v1344_v23 = vpack.c.bf16 %v655_v13, %v655_v13  ;;  %v1360_v24 = vpack.c.bf16 %v791_v14, %v791_v14  ;;  %v658_v25 = vadd.f32 %v1698_v5, %v657_v21  ;;  %v794_v26 = vadd.f32 %v1703_v6, %v793_v22 }
  0xfe   : > { %1000 = vst.msk [vmem:[%s1719_s12 + $0x8] sm:$0xf] %vm917_vm1, %v1346_v17  ;;  %1080 = vst.msk [vmem:[%s1725_s15 + $0x8] sm:$0xf] %vm917_vm1, %v1362_v18  ;;  %v1347_v27 = vpack.c.bf16 %v666_v19, %v666_v19  ;;  %v1363_v28 = vpack.c.bf16 %v802_v20, %v802_v20 }
  0xff   : > { %998 = vst.msk [vmem:[%s1719_s12] sm:$0xf] %vm917_vm1, %v1344_v23  ;;  %1078 = vst.msk [vmem:[%s1725_s15] sm:$0xf] %vm917_vm1, %v1360_v24  ;;  %v1345_v29 = vpack.c.bf16 %v658_v25, %v658_v25  ;;  %v1361_v30 = vpack.c.bf16 %v794_v26, %v794_v26 }
 0x100   : > { %1001 = vst.msk [vmem:[%s1719_s12 + $0xc] sm:$0xf] %vm917_vm1, %v1347_v27  ;;  %1081 = vst.msk [vmem:[%s1725_s15 + $0xc] sm:$0xf] %vm917_vm1, %v1363_v28 }
 0x101   : > { %999 = vst.msk [vmem:[%s1719_s12 + $0x4] sm:$0xf] %vm917_vm1, %v1345_v29  ;;  %1079 = vst.msk [vmem:[%s1725_s15 + $0x4] sm:$0xf] %vm917_vm1, %v1361_v30  ;;  %v1450_v31 = vpop.f32.mrb[12].mxu1  ;;  %v1474_v32 = vpop.f32.mrb[12].mxu0 }
 0x102   : > { %v679_v33 = vadd.f32 %v1450_v31, %v1698_v5  ;;  %v815_v34 = vadd.f32 %v1474_v32, %v1703_v6  ;;  %v670_v35 = vpop.f32.mrb[13].mxu1  ;;  %v806_v36 = vpop.f32.mrb[13].mxu0 }
 0x103   : > { %v671_v37 = vadd.f32 %v1698_v5, %v670_v35  ;;  %v807_v38 = vadd.f32 %v1703_v6, %v806_v36  ;;  %v1451_v39 = vpop.f32.mrb[14].mxu1  ;;  %v1475_v40 = vpop.f32.mrb[14].mxu0 }
 0x104   : > { %v1350_v41 = vpack.c.bf16 %v679_v33, %v679_v33  ;;  %v1366_v42 = vpack.c.bf16 %v815_v34, %v815_v34  ;;  %v682_v43 = vadd.f32 %v1451_v39, %v1698_v5  ;;  %v818_v44 = vadd.f32 %v1475_v40, %v1703_v6  ;;  %v673_v45 = vpop.f32.mrb[15].mxu1  ;;  %v809_v46 = vpop.f32.mrb[15].mxu0 }
 0x105   : > { %v1348_v47 = vpack.c.bf16 %v671_v37, %v671_v37  ;;  %v1364_v48 = vpack.c.bf16 %v807_v38, %v807_v38  ;;  %v674_v49 = vadd.f32 %v1698_v5, %v673_v45  ;;  %v810_v50 = vadd.f32 %v1703_v6, %v809_v46 }
 0x106   : > { %1004 = vst.msk [vmem:[%s1719_s12 + $0x18] sm:$0xf] %vm917_vm1, %v1350_v41  ;;  %1084 = vst.msk [vmem:[%s1725_s15 + $0x18] sm:$0xf] %vm917_vm1, %v1366_v42  ;;  %v1351_v51 = vpack.c.bf16 %v682_v43, %v682_v43  ;;  %v1367_v52 = vpack.c.bf16 %v818_v44, %v818_v44 }
 0x107   : > { %1002 = vst.msk [vmem:[%s1719_s12 + $0x10] sm:$0xf] %vm917_vm1, %v1348_v47  ;;  %1082 = vst.msk [vmem:[%s1725_s15 + $0x10] sm:$0xf] %vm917_vm1, %v1364_v48  ;;  %v1349_v53 = vpack.c.bf16 %v674_v49, %v674_v49  ;;  %v1365_v54 = vpack.c.bf16 %v810_v50, %v810_v50 }
 0x108   : > { %1005 = vst.msk [vmem:[%s1719_s12 + $0x1c] sm:$0xf] %vm917_vm1, %v1351_v51  ;;  %1085 = vst.msk [vmem:[%s1725_s15 + $0x1c] sm:$0xf] %vm917_vm1, %v1367_v52 }
 0x109   : > { %1003 = vst.msk [vmem:[%s1719_s12 + $0x14] sm:$0xf] %vm917_vm1, %v1349_v53  ;;  %1083 = vst.msk [vmem:[%s1725_s15 + $0x14] sm:$0xf] %vm917_vm1, %v1365_v54  ;;  %v1454_v55 = vpop.f32.mrb[16].mxu1  ;;  %v1478_v56 = vpop.f32.mrb[16].mxu0 }
 0x10a   : > { %v695_v57 = vadd.f32 %v1454_v55, %v1698_v5  ;;  %v831_v58 = vadd.f32 %v1478_v56, %v1703_v6  ;;  %v686_v59 = vpop.f32.mrb[17].mxu1  ;;  %v822_v60 = vpop.f32.mrb[17].mxu0 }
 0x10b   : > { %v687_v61 = vadd.f32 %v1698_v5, %v686_v59  ;;  %v823_v62 = vadd.f32 %v1703_v6, %v822_v60  ;;  %v1455_v63 = vpop.f32.mrb[18].mxu1  ;;  %v1479_v0 = vpop.f32.mrb[18].mxu0 }
 0x10c   : > { %v1354_v1 = vpack.c.bf16 %v695_v57, %v695_v57  ;;  %v1370_v2 = vpack.c.bf16 %v831_v58, %v831_v58  ;;  %v698_v3 = vadd.f32 %v1455_v63, %v1698_v5  ;;  %v834_v4 = vadd.f32 %v1479_v0, %v1703_v6  ;;  %v689_v7 = vpop.f32.mrb[19].mxu1  ;;  %v825_v8 = vpop.f32.mrb[19].mxu0 }
 0x10d   : > { %v1352_v9 = vpack.c.bf16 %v687_v61, %v687_v61  ;;  %v1368_v10 = vpack.c.bf16 %v823_v62, %v823_v62  ;;  %v690_v11 = vadd.f32 %v1698_v5, %v689_v7  ;;  %v826_v12 = vadd.f32 %v1703_v6, %v825_v8 }
 0x10e   : > { %1008 = vst.msk [vmem:[%s1719_s12 + $0x28] sm:$0xf] %vm917_vm1, %v1354_v1  ;;  %1088 = vst.msk [vmem:[%s1725_s15 + $0x28] sm:$0xf] %vm917_vm1, %v1370_v2  ;;  %v1355_v13 = vpack.c.bf16 %v698_v3, %v698_v3  ;;  %v1371_v14 = vpack.c.bf16 %v834_v4, %v834_v4 }
 0x10f   : > { %1006 = vst.msk [vmem:[%s1719_s12 + $0x20] sm:$0xf] %vm917_vm1, %v1352_v9  ;;  %1086 = vst.msk [vmem:[%s1725_s15 + $0x20] sm:$0xf] %vm917_vm1, %v1368_v10  ;;  %v1353_v15 = vpack.c.bf16 %v690_v11, %v690_v11  ;;  %v1369_v16 = vpack.c.bf16 %v826_v12, %v826_v12 }
 0x110   : > { %1009 = vst.msk [vmem:[%s1719_s12 + $0x2c] sm:$0xf] %vm917_vm1, %v1355_v13  ;;  %1089 = vst.msk [vmem:[%s1725_s15 + $0x2c] sm:$0xf] %vm917_vm1, %v1371_v14 }
 0x111   : > { %1007 = vst.msk [vmem:[%s1719_s12 + $0x24] sm:$0xf] %vm917_vm1, %v1353_v15  ;;  %1087 = vst.msk [vmem:[%s1725_s15 + $0x24] sm:$0xf] %vm917_vm1, %v1369_v16  ;;  %v1458_v17 = vpop.f32.mrb[20].mxu1  ;;  %v1482_v18 = vpop.f32.mrb[20].mxu0 }
 0x112   : > { %v711_v19 = vadd.f32 %v1458_v17, %v1698_v5  ;;  %v847_v20 = vadd.f32 %v1482_v18, %v1703_v6  ;;  %v702_v21 = vpop.f32.mrb[21].mxu1  ;;  %v838_v22 = vpop.f32.mrb[21].mxu0 }
 0x113   : > { %v703_v23 = vadd.f32 %v1698_v5, %v702_v21  ;;  %v839_v24 = vadd.f32 %v1703_v6, %v838_v22  ;;  %v1459_v25 = vpop.f32.mrb[22].mxu1  ;;  %v1483_v26 = vpop.f32.mrb[22].mxu0 }
 0x114   : > { %v1358_v27 = vpack.c.bf16 %v711_v19, %v711_v19  ;;  %v1374_v28 = vpack.c.bf16 %v847_v20, %v847_v20  ;;  %v714_v29 = vadd.f32 %v1459_v25, %v1698_v5  ;;  %v850_v30 = vadd.f32 %v1483_v26, %v1703_v6  ;;  %v705_v31 = vpop.f32.mrb[23].mxu1  ;;  %v841_v32 = vpop.f32.mrb[23].mxu0 }
 0x115   : > { %v1356_v33 = vpack.c.bf16 %v703_v23, %v703_v23  ;;  %v1372_v34 = vpack.c.bf16 %v839_v24, %v839_v24  ;;  %v706_v35 = vadd.f32 %v1698_v5, %v705_v31  ;;  %v842_v36 = vadd.f32 %v1703_v6, %v841_v32 }
 0x116   : > { %1012 = vst.msk [vmem:[%s1719_s12 + $0x38] sm:$0xf] %vm917_vm1, %v1358_v27  ;;  %1092 = vst.msk [vmem:[%s1725_s15 + $0x38] sm:$0xf] %vm917_vm1, %v1374_v28  ;;  %v1359_v37 = vpack.c.bf16 %v714_v29, %v714_v29  ;;  %v1375_v38 = vpack.c.bf16 %v850_v30, %v850_v30 }
 0x117   : > { %1010 = vst.msk [vmem:[%s1719_s12 + $0x30] sm:$0xf] %vm917_vm1, %v1356_v33  ;;  %1090 = vst.msk [vmem:[%s1725_s15 + $0x30] sm:$0xf] %vm917_vm1, %v1372_v34  ;;  %v1357_v39 = vpack.c.bf16 %v706_v35, %v706_v35  ;;  %v1373_v40 = vpack.c.bf16 %v842_v36, %v842_v36 }
 0x118   : > { %1013 = vst.msk [vmem:[%s1719_s12 + $0x3c] sm:$0xf] %vm917_vm1, %v1359_v37  ;;  %1093 = vst.msk [vmem:[%s1725_s15 + $0x3c] sm:$0xf] %vm917_vm1, %v1375_v38 }
 0x119   : > { %1011 = vst.msk [vmem:[%s1719_s12 + $0x34] sm:$0xf] %vm917_vm1, %v1357_v39  ;;  %1091 = vst.msk [vmem:[%s1725_s15 + $0x34] sm:$0xf] %vm917_vm1, %v1373_v40 }
 0x11a PF: > { %s20_s30 = sadd.s32 1, %s1526_s30  }
 0x11b   : > { %p17_p4 = scmp.ge.s32.totalorder %s20_s30, 4  }
 0x11d   :  { %19 = sbr.rel (!%p17_p4) target bundleno = 1 (0x1), region = 102 }

</bundles_post_ra>
